<compile_context>
chip_gen: v6e
topology: v6e:2x2x1
jax: 0.10.0
libtpu: 0.0.40
codegen_flags: <defaults>
</compile_context>

<pallas_src>
import jax
import jax.numpy as jnp
from jax.experimental import pallas as pl
from jax.experimental.pallas import tpu as pltpu

STATE_DIM = 11
ACTION_DIM = 3
H1 = 400
H2 = 300
H1_PAD = 512   # 400 rounded up to a multiple of 128 lanes
H2_PAD = 384   # 300 rounded up to a multiple of 128 lanes
MAX_TB = 512   # batch rows per grid step (keeps v5e's 16 MiB scoped VMEM happy)


def _round_up(x, m):
    return (x + m - 1) // m * m


def _critic_kernel(s_ref, a_ref, w1s_ref, w1a_ref, b1_ref, w2_ref, b2_ref,
                   w3_ref, b3_ref, o_ref):
    # Layer 1: two small-K MXU dots (K=11, K=3) replace cat([state, action]) @ W1.
    h1 = jnp.dot(s_ref[...], w1s_ref[...], preferred_element_type=jnp.float32)
    h1 = h1 + jnp.dot(a_ref[...], w1a_ref[...], preferred_element_type=jnp.float32)
    h1 = jnp.maximum(h1 + b1_ref[...], 0.0)                       # (TB, 512)

    # Layer 2: lane-aligned 512x384 MXU matmul — the dominant compute.
    h2 = jnp.dot(h1, w2_ref[...], preferred_element_type=jnp.float32)
    h2 = jnp.maximum(h2 + b2_ref[...], 0.0)                       # (TB, 384)

    # Layer 3 (out_features == 1): VPU multiply + cross-lane reduce instead of a
    # degenerate N=1 MXU matmul; b3 is a scalar in SMEM.
    q = jnp.sum(h2 * w3_ref[...], axis=-1, keepdims=True) + b3_ref[0]
    o_ref[...] = q.astype(o_ref.dtype)                            # (TB, 1)


def prepare_params(params):
    """One-time prep: split w1 by input, zero-pad hidden dims to lane multiples."""
    w1, b1, w2, b2, w3, b3 = params
    w1p = jnp.pad(w1, ((0, 0), (0, H1_PAD - H1)))                 # (14, 512)
    w1s = w1p[:STATE_DIM]                                         # (11, 512)
    w1a = w1p[STATE_DIM:]                                         # (3, 512)
    b1p = jnp.pad(b1.reshape(1, H1), ((0, 0), (0, H1_PAD - H1)))  # (1, 512)
    w2p = jnp.pad(w2, ((0, H1_PAD - H1), (0, H2_PAD - H2)))       # (512, 384)
    b2p = jnp.pad(b2.reshape(1, H2), ((0, 0), (0, H2_PAD - H2)))  # (1, 384)
    w3p = jnp.pad(w3.reshape(1, H2), ((0, 0), (0, H2_PAD - H2)))  # (1, 384) row
    b3p = b3.reshape(1).astype(jnp.float32)                       # (1,) scalar
    return (w1s, w1a, b1p, w2p, b2p, w3p, b3p)


def critic_forward(state, action, prepared):
    """state: (B, 11) f32, action: (B, 3) f32 -> (B, 1) f32."""
    w1s, w1a, b1, w2, b2, w3, b3 = prepared
    B = state.shape[0]

    tb = min(MAX_TB, _round_up(max(B, 8), 8))
    b_pad = _round_up(B, tb)
    if b_pad != B:
        state = jnp.pad(state, ((0, b_pad - B), (0, 0)))
        action = jnp.pad(action, ((0, b_pad - B), (0, 0)))
    grid = (b_pad // tb,)

    resident = lambda i: (0, 0)      # weights/biases: same block every step
    batched = lambda i: (i, 0)       # batch-streamed tensors

    out = pl.pallas_call(
        _critic_kernel,
        out_shape=jax.ShapeDtypeStruct((b_pad, 1), jnp.float32),
        grid=grid,
        in_specs=[
            pl.BlockSpec((tb, STATE_DIM), batched),               # state
            pl.BlockSpec((tb, ACTION_DIM), batched),              # action
            pl.BlockSpec((STATE_DIM, H1_PAD), resident),          # w1 (state part)
            pl.BlockSpec((ACTION_DIM, H1_PAD), resident),         # w1 (action part)
            pl.BlockSpec((1, H1_PAD), resident),                  # b1
            pl.BlockSpec((H1_PAD, H2_PAD), resident),             # w2
            pl.BlockSpec((1, H2_PAD), resident),                  # b2
            pl.BlockSpec((1, H2_PAD), resident),                  # w3 (row)
            pl.BlockSpec(memory_space=pltpu.MemorySpace.SMEM),    # b3 scalar
        ],
        out_specs=pl.BlockSpec((tb, 1), batched),
        compiler_params=pltpu.CompilerParams(
            dimension_semantics=("parallel",)),
    )(state, action, w1s, w1a, b1, w2, b2, w3, b3)
    return out[:B]


def init_params(key):
    """Deterministic init matching PyTorch nn.Linear defaults (U(-1/sqrt(fan_in), .))."""
    def linear(key, fan_in, fan_out):
        kw, kb = jax.random.split(key)
        bound = 1.0 / jnp.sqrt(fan_in)
        w = jax.random.uniform(kw, (fan_in, fan_out), jnp.float32, -bound, bound)
        b = jax.random.uniform(kb, (fan_out,), jnp.float32, -bound, bound)
        return w, b

    k1, k2, k3 = jax.random.split(key, 3)
    w1, b1 = linear(k1, STATE_DIM + ACTION_DIM, H1)
    w2, b2 = linear(k2, H1, H2)
    w3, b3 = linear(k3, H2, 1)
    return (w1, b1, w2, b2, w3, b3)


def _reference_forward(state, action, params):
    w1, b1, w2, b2, w3, b3 = params
    x = jnp.concatenate([state, action], axis=1)
    h1 = jnp.maximum(x @ w1 + b1, 0.0)
    h2 = jnp.maximum(h1 @ w2 + b2, 0.0)
    return h2 @ w3 + b3


if __name__ == "__main__":
    key = jax.random.PRNGKey(0)
    kp, ks, ka = jax.random.split(key, 3)

    params = init_params(kp)
    prepared = prepare_params(params)

    # Small batch (single grid step).
    batch = 8
    state = jax.random.normal(ks, (batch, STATE_DIM), jnp.float32)
    action = jax.random.normal(ka, (batch, ACTION_DIM), jnp.float32)
    q = jax.block_until_ready(critic_forward(state, action, prepared))
    q_ref = _reference_forward(state, action, params)
    assert q.shape == (batch, 1), q.shape
    assert jnp.allclose(q, q_ref, atol=1e-3, rtol=1e-3), "mismatch (batch=8)"

    # Larger ragged batch (multiple grid steps + tail padding).
    batch2 = 600
    state2 = jax.random.normal(ks, (batch2, STATE_DIM), jnp.float32)
    action2 = jax.random.normal(ka, (batch2, ACTION_DIM), jnp.float32)
    q2 = jax.block_until_ready(critic_forward(state2, action2, prepared))
    q2_ref = _reference_forward(state2, action2, params)
    assert q2.shape == (batch2, 1), q2.shape
    assert jnp.allclose(q2, q2_ref, atol=1e-3, rtol=1e-3), "mismatch (batch=600)"

    print("KERNEL_OK")
</pallas_src>

<mosaic_0001>
module attributes {stable_mosaic.version = 11 : i64} {
  func.func @_critic_kernel(%arg0: i32, %arg1: memref<8x11xf32, #tpu.memory_space<vmem>>, %arg2: memref<8x3xf32, #tpu.memory_space<vmem>>, %arg3: memref<11x512xf32, #tpu.memory_space<vmem>>, %arg4: memref<3x512xf32, #tpu.memory_space<vmem>>, %arg5: memref<1x512xf32, #tpu.memory_space<vmem>>, %arg6: memref<512x384xf32, #tpu.memory_space<vmem>>, %arg7: memref<1x384xf32, #tpu.memory_space<vmem>>, %arg8: memref<1x384xf32, #tpu.memory_space<vmem>>, %arg9: memref<1xf32, #tpu.memory_space<smem>>, %arg10: memref<8x1xf32, #tpu.memory_space<vmem>>) attributes {dimension_semantics = [#tpu.dimension_semantics<parallel>], iteration_bounds = array<i64: 1>, scalar_prefetch = 0 : i64, scratch_operands = 0 : i64, tpu.core_type = #tpu.core_type<tc>, window_params = [{transform_indices = @transform_0, window_bounds = array<i64: 8, 11>}, {transform_indices = @transform_1, window_bounds = array<i64: 8, 3>}, {pipeline_mode = #tpu.pipeline_mode<synchronous>, transform_indices = @transform_2, window_bounds = array<i64: 11, 512>}, {pipeline_mode = #tpu.pipeline_mode<synchronous>, transform_indices = @transform_3, window_bounds = array<i64: 3, 512>}, {pipeline_mode = #tpu.pipeline_mode<synchronous>, transform_indices = @transform_4, window_bounds = array<i64: 1, 512>}, {pipeline_mode = #tpu.pipeline_mode<synchronous>, transform_indices = @transform_5, window_bounds = array<i64: 512, 384>}, {pipeline_mode = #tpu.pipeline_mode<synchronous>, transform_indices = @transform_6, window_bounds = array<i64: 1, 384>}, {pipeline_mode = #tpu.pipeline_mode<synchronous>, transform_indices = @transform_7, window_bounds = array<i64: 1, 384>}, {transform_indices = @transform_8, window_bounds = array<i64: 1>}, {transform_indices = @transform_9, window_bounds = array<i64: 8, 1>}]} {
    %c0 = arith.constant 0 : index
    %c0_0 = arith.constant 0 : index
    %0 = vector.load %arg1[%c0, %c0_0] : memref<8x11xf32, #tpu.memory_space<vmem>>, vector<8x11xf32>
    %c0_1 = arith.constant 0 : index
    %c0_2 = arith.constant 0 : index
    %1 = vector.load %arg3[%c0_1, %c0_2] : memref<11x512xf32, #tpu.memory_space<vmem>>, vector<11x512xf32>
    %cst = arith.constant dense<0.000000e+00> : vector<8x512xf32>
    %2 = tpu.matmul %0, %1, %cst {dimension_numbers = #tpu.dot_dimension_numbers<[1], [0], [0], [1], [0, 0, 1, 1], [], []>} : vector<8x11xf32>, vector<11x512xf32>, vector<8x512xf32> -> vector<8x512xf32>
    %c0_3 = arith.constant 0 : index
    %c0_4 = arith.constant 0 : index
    %3 = vector.load %arg2[%c0_3, %c0_4] : memref<8x3xf32, #tpu.memory_space<vmem>>, vector<8x3xf32>
    %c0_5 = arith.constant 0 : index
    %c0_6 = arith.constant 0 : index
    %4 = vector.load %arg4[%c0_5, %c0_6] : memref<3x512xf32, #tpu.memory_space<vmem>>, vector<3x512xf32>
    %cst_7 = arith.constant dense<0.000000e+00> : vector<8x512xf32>
    %5 = tpu.matmul %3, %4, %cst_7 {dimension_numbers = #tpu.dot_dimension_numbers<[1], [0], [0], [1], [0, 0, 1, 1], [], []>} : vector<8x3xf32>, vector<3x512xf32>, vector<8x512xf32> -> vector<8x512xf32>
    %6 = arith.addf %2, %5 : vector<8x512xf32>
    %c0_8 = arith.constant 0 : index
    %c0_9 = arith.constant 0 : index
    %7 = vector.load %arg5[%c0_8, %c0_9] : memref<1x512xf32, #tpu.memory_space<vmem>>, vector<1x512xf32>
    %8 = vector.broadcast %7 : vector<1x512xf32> to vector<8x512xf32>
    %9 = arith.addf %6, %8 : vector<8x512xf32>
    %cst_10 = arith.constant 0.000000e+00 : f32
    %10 = vector.broadcast %cst_10 : f32 to vector<8x512xf32>
    %11 = arith.maximumf %9, %10 : vector<8x512xf32>
    %c0_11 = arith.constant 0 : index
    %c0_12 = arith.constant 0 : index
    %12 = vector.load %arg6[%c0_11, %c0_12] : memref<512x384xf32, #tpu.memory_space<vmem>>, vector<512x384xf32>
    %cst_13 = arith.constant dense<0.000000e+00> : vector<8x384xf32>
    %13 = tpu.matmul %11, %12, %cst_13 {dimension_numbers = #tpu.dot_dimension_numbers<[1], [0], [0], [1], [0, 0, 1, 1], [], []>} : vector<8x512xf32>, vector<512x384xf32>, vector<8x384xf32> -> vector<8x384xf32>
    %c0_14 = arith.constant 0 : index
    %c0_15 = arith.constant 0 : index
    %14 = vector.load %arg7[%c0_14, %c0_15] : memref<1x384xf32, #tpu.memory_space<vmem>>, vector<1x384xf32>
    %15 = vector.broadcast %14 : vector<1x384xf32> to vector<8x384xf32>
    %16 = arith.addf %13, %15 : vector<8x384xf32>
    %cst_16 = arith.constant 0.000000e+00 : f32
    %17 = vector.broadcast %cst_16 : f32 to vector<8x384xf32>
    %18 = arith.maximumf %16, %17 : vector<8x384xf32>
    %c0_17 = arith.constant 0 : index
    %c0_18 = arith.constant 0 : index
    %19 = vector.load %arg8[%c0_17, %c0_18] : memref<1x384xf32, #tpu.memory_space<vmem>>, vector<1x384xf32>
    %20 = vector.broadcast %19 : vector<1x384xf32> to vector<8x384xf32>
    %21 = arith.mulf %18, %20 : vector<8x384xf32>
    %cst_19 = arith.constant dense<0.000000e+00> : vector<8xf32>
    %22 = vector.multi_reduction <add>, %21, %cst_19 [1] : vector<8x384xf32> to vector<8xf32>
    %23 = vector.shape_cast %22 : vector<8xf32> to vector<8x1xf32>
    %c0_20 = arith.constant 0 : index
    %24 = memref.load %arg9[%c0_20] : memref<1xf32, #tpu.memory_space<smem>>
    %25 = vector.broadcast %24 : f32 to vector<8x1xf32>
    %26 = arith.addf %23, %25 : vector<8x1xf32>
    %c0_21 = arith.constant 0 : index
    %c0_22 = arith.constant 0 : index
    %27 = vector.load %arg10[%c0_21, %c0_22] : memref<8x1xf32, #tpu.memory_space<vmem>>, vector<8x1xf32>
    tpu.vector_store %arg10[%c0_21, %c0_22], %26 {strides = array<i32>} : memref<8x1xf32, #tpu.memory_space<vmem>>, vector<8x1xf32>,
    return
  }
  func.func @transform_0(%arg0: i32) -> (i32, i32) {
    %c0_i32 = arith.constant 0 : i32
    %c0_i32_0 = arith.constant 0 : i32
    return %arg0, %c0_i32 : i32, i32
  }
  func.func @transform_1(%arg0: i32) -> (i32, i32) {
    %c0_i32 = arith.constant 0 : i32
    %c0_i32_0 = arith.constant 0 : i32
    return %arg0, %c0_i32 : i32, i32
  }
  func.func @transform_2(%arg0: i32) -> (i32, i32) {
    %c0_i32 = arith.constant 0 : i32
    %c0_i32_0 = arith.constant 0 : i32
    %c0_i32_1 = arith.constant 0 : i32
    return %c0_i32, %c0_i32_0 : i32, i32
  }
  func.func @transform_3(%arg0: i32) -> (i32, i32) {
    %c0_i32 = arith.constant 0 : i32
    %c0_i32_0 = arith.constant 0 : i32
    %c0_i32_1 = arith.constant 0 : i32
    return %c0_i32, %c0_i32_0 : i32, i32
  }
  func.func @transform_4(%arg0: i32) -> (i32, i32) {
    %c0_i32 = arith.constant 0 : i32
    %c0_i32_0 = arith.constant 0 : i32
    %c0_i32_1 = arith.constant 0 : i32
    return %c0_i32, %c0_i32_0 : i32, i32
  }
  func.func @transform_5(%arg0: i32) -> (i32, i32) {
    %c0_i32 = arith.constant 0 : i32
    %c0_i32_0 = arith.constant 0 : i32
    %c0_i32_1 = arith.constant 0 : i32
    return %c0_i32, %c0_i32_0 : i32, i32
  }
  func.func @transform_6(%arg0: i32) -> (i32, i32) {
    %c0_i32 = arith.constant 0 : i32
    %c0_i32_0 = arith.constant 0 : i32
    %c0_i32_1 = arith.constant 0 : i32
    return %c0_i32, %c0_i32_0 : i32, i32
  }
  func.func @transform_7(%arg0: i32) -> (i32, i32) {
    %c0_i32 = arith.constant 0 : i32
    %c0_i32_0 = arith.constant 0 : i32
    %c0_i32_1 = arith.constant 0 : i32
    return %c0_i32, %c0_i32_0 : i32, i32
  }
  func.func @transform_8(%arg0: i32) -> i32 {
    %c0_i32 = arith.constant 0 : i32
    %c0_i32_0 = arith.constant 0 : i32
    return %c0_i32 : i32
  }
  func.func @transform_9(%arg0: i32) -> (i32, i32) {
    %c0_i32 = arith.constant 0 : i32
    %c0_i32_0 = arith.constant 0 : i32
    return %arg0, %c0_i32 : i32, i32
  }
}

</mosaic_0001>

<bundles_post_ra>
// kernel: tpu_custom_call.1
= control target key start
LH: loop header
LB: loop body
LE: loop exit
PB: predicated region body
PF: predicated region fallthrough
CT: control target
= control target key end

     0   :  { %15 = vsyncpa [#allocation4], 0  ;;  %s1244_s0 = inlined_call_operand.hbm [shape: f32[8,11], index: 0, kind: input, shape index: {}]   ;;  %s1245_s1 = inlined_call_operand.vmem [shape: f32[8,3], index: 1, kind: input, shape index: {}]   ;;  %s1246_s2 = inlined_call_operand.hbm [shape: f32[11,512], index: 2, kind: input, shape index: {}]   ;;  %s1247_s3 = inlined_call_operand.vmem [shape: f32[3,512], index: 3, kind: input, shape index: {}]   ;;  %s1248_s4 = inlined_call_operand.vmem [shape: f32[1,512], index: 4, kind: input, shape index: {}]   ;;  %s1249_s5 = inlined_call_operand.hbm [shape: f32[512,384], index: 5, kind: input, shape index: {}]   ;;  %s1250_s6 = inlined_call_operand.vmem [shape: f32[1,384], index: 6, kind: input, shape index: {}]   ;;  %s1251_s7 = inlined_call_operand.vmem [shape: f32[1,384], index: 7, kind: input, shape index: {}]   ;;  %s1252_s8 = inlined_call_operand.<no memory space> [shape: f32[1], index: 8, kind: input, shape index: {}]   ;;  %s1253_s9 = inlined_call_operand.vmem [shape: f32[8,1], index: 9, kind: output, shape index: {}]  }
   0x1   :  { %16 = vsyncpa [#allocation6], 0  ;;  %s1116_s30 = smov [#allocation5]  }
   0x2   :  { %s34_s10 = sshll.u32 %s1116_s30, 4  ;;  %s35_s10 = int_to_ptr.vmem [resolvable:$true] %s34_s10 }
   0x3   :  { %s1060_s11 = scalar_lea.vmem %s35_s10, 1024  ;;  %p1065_p1 = scmp.lt.s32.totalorder %s35_s10, %s35_s10 }
   0x4   :  { %p1061_p0 = scmp.ne.s32.totalorder %s35_s10, %s1060_s11  ;;  %p1066_p2 = scmp.lt.s32.totalorder %s1060_s11, %s1060_s11 }
   0x6   :  { %p1067_p3 = por %p1066_p2, %p1065_p1 }
   0x8   :  { %p1068_p4 = pnand %p1067_p3, %p1061_p0 }
   0xa   :  { %1071 = shalt.err (!%p1068_p4)
}
   0xb   :  { %s1117_s12 = smov 512   ;;  %s1118_s13 = smov 32  }
   0xc   :  { %40 = dma.hbm_to_vmem [thread:$0]  %s1246_s2, 1024, %s35_s10, [#allocation6], %s1117_s12, %s1117_s12, %s1118_s13  }
   0xd   :  { %s1119_s16 = smov [#allocation3]   ;;  %s1120_s18 = smov [#allocation7]  }
   0xe   :  { %s23_s17 = sshll.u32 %s1119_s16, 4  ;;  %s50_s19 = sshll.u32 %s1120_s18, 4  ;;  %s24_s17 = int_to_ptr.vmem [resolvable:$true] %s23_s17  ;;  %s51_s19 = int_to_ptr.vmem [resolvable:$true] %s50_s19 }
   0xf   :  { %s1080_s20 = scalar_lea.vmem %s24_s17, 128  ;;  %p1085_p6 = scmp.lt.s32.totalorder %s24_s17, %s24_s17 }
  0x10   :  { %p1081_p5 = scmp.ne.s32.totalorder %s24_s17, %s1080_s20  ;;  %p1086_p7 = scmp.lt.s32.totalorder %s1080_s20, %s1080_s20 }
  0x12   :  { %p1087_p8 = por %p1086_p7, %p1085_p6 }
  0x14   :  { %p1088_p9 = pnand %p1087_p8, %p1081_p5 }
  0x16   :  { %1091 = shalt.err (!%p1088_p9)
}
  0x17   :  { %26 = dma.hbm_to_vmem [thread:$0]  %s1244_s0, 128, %s24_s17, [#allocation4]  }
  0x18   :  { %s1100_s23 = scalar_lea.vmem %s51_s19, 24576  ;;  %p1105_p11 = scmp.lt.s32.totalorder %s51_s19, %s51_s19 }
  0x19   :  { %p1101_p10 = scmp.ne.s32.totalorder %s51_s19, %s1100_s23  ;;  %p1106_p12 = scmp.lt.s32.totalorder %s1100_s23, %s1100_s23 }
  0x1b   :  { %p1107_p13 = por %p1106_p12, %p1105_p11 }
  0x1d   :  { %p1108_p0 = pnand %p1107_p13, %p1101_p10 }
  0x1f   :  { %1111 = shalt.err (!%p1108_p0)
}
  0x20   :  { %s1121_s2 = smov 384   ;;  %s1122_s24 = smov 24  }
  0x21   :  { %56 = dma.hbm_to_vmem [thread:$0]  %s1249_s5, 24576, %s51_s19, [#allocation6], %s1121_s2, %s1121_s2, %s1122_s24  }
  0x22   :  { %1112 = dma.done.wait [#allocation4], 128  }
  0x23   :  { %1113 = vsyncadd [#allocation4], 4294967168 }
  0x24   :  { %1114 = dma.done.wait [#allocation6], 25600  }
  0x25   :  { %1115 = vsyncadd [#allocation6], 4294941696  ;;  %v1123_v0 = vmov 0.0   ;;  %v82_v1 = vld [vmem:[%s1247_s3] sm:$0x77]  ;;  %vm92_vm0 = vcmask 1042432  }
  0x26   :  { %165 = vmatprep.mubr.f32.mxu0 %v1123_v0  ;;  %236 = vmatprep.mubr.f32.mxu1 %v1123_v0  ;;  %v83_v2 = vld [vmem:[%s1247_s3 + $0x8] sm:$0x77]  ;;  %v86_v3 = vcombine.high %v82_v1, %v82_v1  ;;  %v81_v5 = vld [vmem:[%s1245_s1] sm:$0xff]  ;;  %vm88_vm1 = vcmask 23552   ;;  %v78_v6 = vld [vmem:[#allocation5 + $0x28] sm:$0x7] }
  0x27   :  { %v87_v4 = vcombine.high %v83_v2, %v83_v2  ;;  %v80_v7 = vld [vmem:[#allocation5 + $0x38] sm:$0x7]  ;;  %v77_v8 = vld [vmem:[#allocation5 + $0x20] sm:$0x7]  ;;  %v79_v9 = vld [vmem:[#allocation5 + $0x30] sm:$0x7] }
  0x28   :  { %960 = vmatprep.subr.msk.mxu0 %vm92_vm0, %v86_v3  ;;  %v74_v10 = vld [vmem:[#allocation5 + $0x8] sm:$0xff]  ;;  %v76_v11 = vld [vmem:[#allocation5 + $0x18] sm:$0xff]  ;;  %v73_v12 = vld [vmem:[#allocation5] sm:$0xff]  ;;  %vm243_vm2 = vcmask 89088   ;;  %vm952_vm3 = vcmask 7168  }
  0x29   :  { %963 = vmatprep.subr.msk.mxu1 %vm92_vm0, %v87_v4  ;;  %961 = vmatpush1.msk.msra.mxu0 %vm92_vm0, %v82_v1  ;;  %v75_v13 = vld [vmem:[#allocation5 + $0x10] sm:$0xff]  ;;  %v72_v14 = vld [vmem:[#allocation3] sm:$0xff]  ;;  %v476_v17 = vld [vmem:[#allocation7 + $0x168] sm:$0xff] }
  0x2a   :  { %964 = vmatpush1.msk.msra.mxu1 %vm92_vm0, %v83_v2  ;;  %962 = vmatmul.mubr.msk.f32.vlgmr.msra.gmra.mxu0 %vm88_vm1, %v81_v5  ;;  %v477_v15 = vld [vmem:[#allocation7 + $0x170] sm:$0xff]  ;;  %v572_v18 = vld [vmem:[#allocation7 + $0x468] sm:$0xff]  ;;  %v474_v19 = vld [vmem:[#allocation7 + $0x158] sm:$0xff] }
  0x2b   :  { %965 = vmatmul.mubr.msk.f32.vlgmr.msra.gmra.mxu1 %vm88_vm1, %v81_v5  ;;  %966 = vmatprep.subr.msk.mxu0 %vm92_vm0, %v78_v6  ;;  %v573_v16 = vld [vmem:[#allocation7 + $0x470] sm:$0xff]  ;;  %v570_v20 = vld [vmem:[#allocation7 + $0x458] sm:$0xff]  ;;  %v471_v23 = vld [vmem:[#allocation7 + $0x140] sm:$0xff] }
  0x2c   :  { %969 = vmatprep.subr.msk.mxu1 %vm92_vm0, %v80_v7  ;;  %967 = vmatpush1.msk.msra.mxu0 %vm92_vm0, %v77_v8  ;;  %v473_v21 = vld [vmem:[#allocation7 + $0x150] sm:$0xff]  ;;  %v567_v24 = vld [vmem:[#allocation7 + $0x440] sm:$0xff]  ;;  %v470_v25 = vld [vmem:[#allocation7 + $0x138] sm:$0xff] }
  0x2d   :  { %970 = vmatpush1.msk.msra.mxu1 %vm92_vm0, %v79_v9  ;;  %289 = vmatprep.subr.mxu0 %v74_v10  ;;  %v569_v22 = vld [vmem:[#allocation7 + $0x450] sm:$0xff]  ;;  %v566_v26 = vld [vmem:[#allocation7 + $0x438] sm:$0xff]  ;;  %v468_v27 = vld [vmem:[#allocation7 + $0x128] sm:$0xff] }
  0x2e   :  { %360 = vmatprep.subr.mxu1 %v76_v11  ;;  %290 = vmatpush1.msra.mxu0 %v73_v12  ;;  %v564_v28 = vld [vmem:[#allocation7 + $0x428] sm:$0xff]  ;;  %v467_v29 = vld [vmem:[#allocation7 + $0x120] sm:$0xff]  ;;  %v465_v31 = vld [vmem:[#allocation7 + $0x110] sm:$0xff] }
  0x2f   :  { %323 = vmatprep.mubr.f32.mxu0 %v1123_v0  ;;  %361 = vmatpush1.msra.mxu1 %v75_v13  ;;  %v563_v30 = vld [vmem:[#allocation7 + $0x420] sm:$0xff]  ;;  %v561_v32 = vld [vmem:[#allocation7 + $0x410] sm:$0xff]  ;;  %v464_v33 = vld [vmem:[#allocation7 + $0x108] sm:$0xff] }
  0x30   :  { %394 = vmatprep.mubr.f32.mxu1 %v1123_v0  ;;  %968 = vmatmul.mubr.msk.f32.vlgmr.msra.gmra.mxu0 %vm243_vm2, %v72_v14  ;;  %v560_v34 = vld [vmem:[#allocation7 + $0x408] sm:$0xff]  ;;  %v462_v35 = vld [vmem:[#allocation7 + $0xf8] sm:$0xff]  ;;  %v461_v37 = vld [vmem:[#allocation7 + $0xf0] sm:$0xff] }
  0x31   :  { %971 = vmatmul.mubr.msk.f32.vlgmr.msra.gmra.mxu1 %vm243_vm2, %v72_v14  ;;  %640 = vmatprep.subr.mxu0 %v477_v15  ;;  %v558_v36 = vld [vmem:[#allocation7 + $0x3f8] sm:$0xff]  ;;  %v557_v38 = vld [vmem:[#allocation7 + $0x3f0] sm:$0xff]  ;;  %v459_v39 = vld [vmem:[#allocation7 + $0xe0] sm:$0xff] }
  0x32   :  { %711 = vmatprep.subr.mxu1 %v573_v16  ;;  %641 = vmatpush1.msra.mxu0 %v476_v17  ;;  %v555_v40 = vld [vmem:[#allocation7 + $0x3e0] sm:$0xff]  ;;  %v458_v41 = vld [vmem:[#allocation7 + $0xd8] sm:$0xff]  ;;  %v456_v43 = vld [vmem:[#allocation7 + $0xc8] sm:$0xff] }
  0x33   :  { %712 = vmatpush1.msra.mxu1 %v572_v18  ;;  %642 = vmatprep.subr.mxu0 %v474_v19  ;;  %v554_v42 = vld [vmem:[#allocation7 + $0x3d8] sm:$0xff]  ;;  %v552_v44 = vld [vmem:[#allocation7 + $0x3c8] sm:$0xff]  ;;  %v455_v45 = vld [vmem:[#allocation7 + $0xc0] sm:$0xff] }
  0x34   :  { %713 = vmatprep.subr.mxu1 %v570_v20  ;;  %643 = vmatpush1.msra.mxu0 %v473_v21  ;;  %v551_v46 = vld [vmem:[#allocation7 + $0x3c0] sm:$0xff]  ;;  %v453_v47 = vld [vmem:[#allocation7 + $0xb0] sm:$0xff]  ;;  %v452_v49 = vld [vmem:[#allocation7 + $0xa8] sm:$0xff] }
  0x35   :  { %714 = vmatpush1.msra.mxu1 %v569_v22  ;;  %644 = vmatprep.subr.mxu0 %v471_v23  ;;  %v549_v48 = vld [vmem:[#allocation7 + $0x3b0] sm:$0xff]  ;;  %v548_v50 = vld [vmem:[#allocation7 + $0x3a8] sm:$0xff]  ;;  %v450_v51 = vld [vmem:[#allocation7 + $0x98] sm:$0xff] }
  0x36   :  { %715 = vmatprep.subr.mxu1 %v567_v24  ;;  %645 = vmatpush1.msra.mxu0 %v470_v25  ;;  %v546_v52 = vld [vmem:[#allocation7 + $0x398] sm:$0xff]  ;;  %v449_v53 = vld [vmem:[#allocation7 + $0x90] sm:$0xff]  ;;  %v447_v55 = vld [vmem:[#allocation7 + $0x80] sm:$0xff] }
  0x37   :  { %716 = vmatpush1.msra.mxu1 %v566_v26  ;;  %646 = vmatprep.subr.mxu0 %v468_v27  ;;  %v545_v54 = vld [vmem:[#allocation7 + $0x390] sm:$0xff]  ;;  %v543_v56 = vld [vmem:[#allocation7 + $0x380] sm:$0xff]  ;;  %v446_v57 = vld [vmem:[#allocation7 + $0x78] sm:$0xff] }
  0x38   :  { %717 = vmatprep.subr.mxu1 %v564_v28  ;;  %647 = vmatpush1.msra.mxu0 %v467_v29  ;;  %v542_v58 = vld [vmem:[#allocation7 + $0x378] sm:$0xff]  ;;  %v444_v59 = vld [vmem:[#allocation7 + $0x68] sm:$0xff]  ;;  %v443_v61 = vld [vmem:[#allocation7 + $0x60] sm:$0xff] }
  0x39   :  { %718 = vmatpush1.msra.mxu1 %v563_v30  ;;  %648 = vmatprep.subr.mxu0 %v465_v31  ;;  %v540_v60 = vld [vmem:[#allocation7 + $0x368] sm:$0xff]  ;;  %v539_v62 = vld [vmem:[#allocation7 + $0x360] sm:$0xff]  ;;  %v441_v63 = vld [vmem:[#allocation7 + $0x50] sm:$0xff] }
  0x3a   :  { %719 = vmatprep.subr.mxu1 %v561_v32  ;;  %649 = vmatpush1.msra.mxu0 %v464_v33  ;;  %v537_v0 = vld [vmem:[#allocation7 + $0x350] sm:$0xff]  ;;  %v440_v1 = vld [vmem:[#allocation7 + $0x48] sm:$0xff]  ;;  %v438_v3 = vld [vmem:[#allocation7 + $0x38] sm:$0xff] }
  0x3b   :  { %720 = vmatpush1.msra.mxu1 %v560_v34  ;;  %650 = vmatprep.subr.mxu0 %v462_v35  ;;  %v536_v2 = vld [vmem:[#allocation7 + $0x348] sm:$0xff]  ;;  %v534_v4 = vld [vmem:[#allocation7 + $0x338] sm:$0xff]  ;;  %v437_v5 = vld [vmem:[#allocation7 + $0x30] sm:$0xff] }
  0x3c   :  { %721 = vmatprep.subr.mxu1 %v558_v36  ;;  %651 = vmatpush1.msra.mxu0 %v461_v37  ;;  %v533_v6 = vld [vmem:[#allocation7 + $0x330] sm:$0xff]  ;;  %v435_v7 = vld [vmem:[#allocation7 + $0x20] sm:$0xff]  ;;  %v434_v9 = vld [vmem:[#allocation7 + $0x18] sm:$0xff] }
  0x3d   :  { %722 = vmatpush1.msra.mxu1 %v557_v38  ;;  %652 = vmatprep.subr.mxu0 %v459_v39  ;;  %v531_v8 = vld [vmem:[#allocation7 + $0x320] sm:$0xff]  ;;  %v530_v10 = vld [vmem:[#allocation7 + $0x318] sm:$0xff]  ;;  %v432_v11 = vld [vmem:[#allocation7 + $0x8] sm:$0xff] }
  0x3e   :  { %723 = vmatprep.subr.mxu1 %v555_v40  ;;  %653 = vmatpush1.msra.mxu0 %v458_v41  ;;  %v528_v12 = vld [vmem:[#allocation7 + $0x308] sm:$0xff]  ;;  %v431_v13 = vld [vmem:[#allocation7] sm:$0xff]  ;;  %v525_v15 = vld [vmem:[#allocation7 + $0x2f0] sm:$0xff] }
  0x3f   :  { %724 = vmatpush1.msra.mxu1 %v554_v42  ;;  %654 = vmatprep.subr.mxu0 %v456_v43  ;;  %v527_v14 = vld [vmem:[#allocation7 + $0x300] sm:$0xff]  ;;  %v621_v16 = vld [vmem:[#allocation7 + $0x5f0] sm:$0xff]  ;;  %v524_v17 = vld [vmem:[#allocation7 + $0x2e8] sm:$0xff] }
  0x40   :  { %725 = vmatprep.subr.mxu1 %v552_v44  ;;  %655 = vmatpush1.msra.mxu0 %v455_v45  ;;  %v620_v18 = vld [vmem:[#allocation7 + $0x5e8] sm:$0xff]  ;;  %v522_v19 = vld [vmem:[#allocation7 + $0x2d8] sm:$0xff]  ;;  %v521_v21 = vld [vmem:[#allocation7 + $0x2d0] sm:$0xff] }
  0x41   :  { %726 = vmatpush1.msra.mxu1 %v551_v46  ;;  %656 = vmatprep.subr.mxu0 %v453_v47  ;;  %v618_v20 = vld [vmem:[#allocation7 + $0x5d8] sm:$0xff]  ;;  %v617_v22 = vld [vmem:[#allocation7 + $0x5d0] sm:$0xff]  ;;  %v519_v23 = vld [vmem:[#allocation7 + $0x2c0] sm:$0xff] }
  0x42   :  { %727 = vmatprep.subr.mxu1 %v549_v48  ;;  %657 = vmatpush1.msra.mxu0 %v452_v49  ;;  %v615_v24 = vld [vmem:[#allocation7 + $0x5c0] sm:$0xff]  ;;  %v518_v25 = vld [vmem:[#allocation7 + $0x2b8] sm:$0xff]  ;;  %v516_v27 = vld [vmem:[#allocation7 + $0x2a8] sm:$0xff] }
  0x43   :  { %728 = vmatpush1.msra.mxu1 %v548_v50  ;;  %658 = vmatprep.subr.mxu0 %v450_v51  ;;  %v614_v26 = vld [vmem:[#allocation7 + $0x5b8] sm:$0xff]  ;;  %v612_v28 = vld [vmem:[#allocation7 + $0x5a8] sm:$0xff]  ;;  %v515_v29 = vld [vmem:[#allocation7 + $0x2a0] sm:$0xff] }
  0x44   :  { %729 = vmatprep.subr.mxu1 %v546_v52  ;;  %659 = vmatpush1.msra.mxu0 %v449_v53  ;;  %v611_v30 = vld [vmem:[#allocation7 + $0x5a0] sm:$0xff]  ;;  %v513_v31 = vld [vmem:[#allocation7 + $0x290] sm:$0xff]  ;;  %v512_v33 = vld [vmem:[#allocation7 + $0x288] sm:$0xff] }
  0x45   :  { %730 = vmatpush1.msra.mxu1 %v545_v54  ;;  %660 = vmatprep.subr.mxu0 %v447_v55  ;;  %v609_v32 = vld [vmem:[#allocation7 + $0x590] sm:$0xff]  ;;  %v608_v34 = vld [vmem:[#allocation7 + $0x588] sm:$0xff]  ;;  %v510_v35 = vld [vmem:[#allocation7 + $0x278] sm:$0xff] }
  0x46   :  { %731 = vmatprep.subr.mxu1 %v543_v56  ;;  %661 = vmatpush1.msra.mxu0 %v446_v57  ;;  %v606_v36 = vld [vmem:[#allocation7 + $0x578] sm:$0xff]  ;;  %v509_v37 = vld [vmem:[#allocation7 + $0x270] sm:$0xff]  ;;  %v507_v39 = vld [vmem:[#allocation7 + $0x260] sm:$0xff] }
  0x47   :  { %732 = vmatpush1.msra.mxu1 %v542_v58  ;;  %662 = vmatprep.subr.mxu0 %v444_v59  ;;  %v605_v38 = vld [vmem:[#allocation7 + $0x570] sm:$0xff]  ;;  %v603_v40 = vld [vmem:[#allocation7 + $0x560] sm:$0xff]  ;;  %v506_v41 = vld [vmem:[#allocation7 + $0x258] sm:$0xff] }
  0x48   :  { %733 = vmatprep.subr.mxu1 %v540_v60  ;;  %663 = vmatpush1.msra.mxu0 %v443_v61  ;;  %v602_v42 = vld [vmem:[#allocation7 + $0x558] sm:$0xff]  ;;  %v504_v43 = vld [vmem:[#allocation7 + $0x248] sm:$0xff]  ;;  %v503_v45 = vld [vmem:[#allocation7 + $0x240] sm:$0xff] }
  0x49   :  { %734 = vmatpush1.msra.mxu1 %v539_v62  ;;  %664 = vmatprep.subr.mxu0 %v441_v63  ;;  %v600_v44 = vld [vmem:[#allocation7 + $0x548] sm:$0xff]  ;;  %v599_v46 = vld [vmem:[#allocation7 + $0x540] sm:$0xff]  ;;  %v501_v47 = vld [vmem:[#allocation7 + $0x230] sm:$0xff] }
  0x4a   :  { %735 = vmatprep.subr.mxu1 %v537_v0  ;;  %665 = vmatpush1.msra.mxu0 %v440_v1  ;;  %v597_v48 = vld [vmem:[#allocation7 + $0x530] sm:$0xff]  ;;  %v500_v49 = vld [vmem:[#allocation7 + $0x228] sm:$0xff]  ;;  %v498_v51 = vld [vmem:[#allocation7 + $0x218] sm:$0xff] }
  0x4b   :  { %736 = vmatpush1.msra.mxu1 %v536_v2  ;;  %666 = vmatprep.subr.mxu0 %v438_v3  ;;  %v596_v50 = vld [vmem:[#allocation7 + $0x528] sm:$0xff]  ;;  %v594_v52 = vld [vmem:[#allocation7 + $0x518] sm:$0xff]  ;;  %v497_v53 = vld [vmem:[#allocation7 + $0x210] sm:$0xff] }
  0x4c   :  { %737 = vmatprep.subr.mxu1 %v534_v4  ;;  %667 = vmatpush1.msra.mxu0 %v437_v5  ;;  %v593_v54 = vld [vmem:[#allocation7 + $0x510] sm:$0xff]  ;;  %v495_v55 = vld [vmem:[#allocation7 + $0x200] sm:$0xff]  ;;  %v494_v57 = vld [vmem:[#allocation7 + $0x1f8] sm:$0xff] }
  0x4d   :  { %738 = vmatpush1.msra.mxu1 %v533_v6  ;;  %668 = vmatprep.subr.mxu0 %v435_v7  ;;  %v591_v56 = vld [vmem:[#allocation7 + $0x500] sm:$0xff]  ;;  %v590_v58 = vld [vmem:[#allocation7 + $0x4f8] sm:$0xff]  ;;  %v492_v59 = vld [vmem:[#allocation7 + $0x1e8] sm:$0xff] }
  0x4e   :  { %739 = vmatprep.subr.mxu1 %v531_v8  ;;  %669 = vmatpush1.msra.mxu0 %v434_v9  ;;  %v588_v60 = vld [vmem:[#allocation7 + $0x4e8] sm:$0xff]  ;;  %v491_v61 = vld [vmem:[#allocation7 + $0x1e0] sm:$0xff]  ;;  %v489_v63 = vld [vmem:[#allocation7 + $0x1d0] sm:$0xff] }
  0x4f   :  { %740 = vmatpush1.msra.mxu1 %v530_v10  ;;  %670 = vmatprep.subr.mxu0 %v432_v11  ;;  %v587_v62 = vld [vmem:[#allocation7 + $0x4e0] sm:$0xff]  ;;  %v585_v0 = vld [vmem:[#allocation7 + $0x4d0] sm:$0xff]  ;;  %v488_v1 = vld [vmem:[#allocation7 + $0x1c8] sm:$0xff] }
  0x50   :  { %741 = vmatprep.subr.mxu1 %v528_v12  ;;  %671 = vmatpush1.msra.mxu0 %v431_v13  ;;  %v584_v2 = vld [vmem:[#allocation7 + $0x4c8] sm:$0xff]  ;;  %v486_v3 = vld [vmem:[#allocation7 + $0x1b8] sm:$0xff]  ;;  %v485_v5 = vld [vmem:[#allocation7 + $0x1b0] sm:$0xff] }
  0x51   :  { %742 = vmatpush1.msra.mxu1 %v527_v14  ;;  %672 = vmatprep.subr.mxu0 %v525_v15  ;;  %v582_v4 = vld [vmem:[#allocation7 + $0x4b8] sm:$0xff]  ;;  %v581_v6 = vld [vmem:[#allocation7 + $0x4b0] sm:$0xff]  ;;  %v483_v7 = vld [vmem:[#allocation7 + $0x1a0] sm:$0xff] }
  0x52   :  { %743 = vmatprep.subr.mxu1 %v621_v16  ;;  %673 = vmatpush2.msra.mxu0 %v524_v17  ;;  %v579_v8 = vld [vmem:[#allocation7 + $0x4a0] sm:$0xff]  ;;  %v482_v9 = vld [vmem:[#allocation7 + $0x198] sm:$0xff]  ;;  %v480_v11 = vld [vmem:[#allocation7 + $0x188] sm:$0xff]  ;;  %v403_v17 = vlaneseq }
  0x53   :  { %744 = vmatpush2.msra.mxu1 %v620_v18  ;;  %674 = vmatprep.subr.mxu0 %v522_v19  ;;  %v578_v10 = vld [vmem:[#allocation7 + $0x498] sm:$0xff]  ;;  %v576_v12 = vld [vmem:[#allocation7 + $0x488] sm:$0xff]  ;;  %v479_v13 = vld [vmem:[#allocation7 + $0x180] sm:$0xff] }
  0x54   :  { %745 = vmatprep.subr.mxu1 %v618_v20  ;;  %675 = vmatpush2.msra.mxu0 %v521_v21  ;;  %v575_v14 = vld [vmem:[#allocation7 + $0x480] sm:$0xff]  ;;  %v526_v15 = vld [vmem:[#allocation7 + $0x2f8] sm:$0xff]  ;;  %v404_v18 = vshrl.u32 %v403_v17, 7 }
  0x55   :  { %746 = vmatpush2.msra.mxu1 %v617_v22  ;;  %676 = vmatprep.subr.mxu0 %v519_v23  ;;  %v622_v16 = vld [vmem:[#allocation7 + $0x5f8] sm:$0xff] }
  0x56   :  { %747 = vmatprep.subr.mxu1 %v615_v24  ;;  %677 = vmatpush2.msra.mxu0 %v518_v25  ;;  %v1200_v23 = vsub.s32 0, %v404_v18  ;;  %v1202_v24 = vsub.s32 2, %v404_v18  ;;  %v401_v25 = vld [vmem:[%s1248_s4] sm:$0xf] }
  0x57   :  { %748 = vmatpush2.msra.mxu1 %v614_v26  ;;  %678 = vmatprep.subr.mxu0 %v516_v27  ;;  %v1207_v26 = vsub.s32 1, %v404_v18  ;;  %v417_v27 = vsub.s32 3, %v404_v18  ;;  %v550_v17 = vld [vmem:[#allocation7 + $0x3b8] sm:$0xff]  ;;  %v499_v18 = vld [vmem:[#allocation7 + $0x220] sm:$0xff] }
  0x58   :  { %749 = vmatprep.subr.mxu1 %v612_v28  ;;  %679 = vmatpush2.msra.mxu0 %v515_v29  ;;  %v406_v29 = vrot.slane %v401_v25, %v1200_v23 }
  0x59   :  { %750 = vmatpush2.msra.mxu1 %v611_v30  ;;  %680 = vmatprep.subr.mxu0 %v513_v31  ;;  %v414_v31 = vrot.slane %v401_v25, %v1202_v24 }
  0x5a   :  { %751 = vmatprep.subr.mxu1 %v609_v32  ;;  %681 = vmatpush2.msra.mxu0 %v512_v33 }
  0x5b   :  { %752 = vmatpush2.msra.mxu1 %v608_v34  ;;  %682 = vmatprep.subr.mxu0 %v510_v35  ;;  %v410_v34 = vrot.slane %v401_v25, %v1207_v26  ;;  %v418_v35 = vrot.slane %v401_v25, %v417_v27  ;;  %v592_v25 = vld [vmem:[#allocation7 + $0x508] sm:$0xff] }
  0x5c   :  { %753 = vmatprep.subr.mxu1 %v606_v36  ;;  %683 = vmatpush2.msra.mxu0 %v509_v37  ;;  %v448_v27 = vld [vmem:[#allocation7 + $0x88] sm:$0xff] }
  0x5d   :  { %754 = vmatpush2.msra.mxu1 %v605_v38  ;;  %684 = vmatprep.subr.mxu0 %v507_v39 }
  0x5e   :  { %755 = vmatprep.subr.mxu1 %v603_v40  ;;  %685 = vmatpush2.msra.mxu0 %v506_v41 }
  0x5f   :  { %756 = vmatpush2.msra.mxu1 %v602_v42  ;;  %686 = vmatprep.subr.mxu0 %v504_v43 }
  0x60   :  { %757 = vmatprep.subr.mxu1 %v600_v44  ;;  %687 = vmatpush2.msra.mxu0 %v503_v45 }
  0x61   :  { %758 = vmatpush2.msra.mxu1 %v599_v46  ;;  %688 = vmatprep.subr.mxu0 %v501_v47 }
  0x62   :  { %759 = vmatprep.subr.mxu1 %v597_v48  ;;  %689 = vmatpush2.msra.mxu0 %v500_v49  ;;  %v478_v48 = vld [vmem:[#allocation7 + $0x178] sm:$0xff] }
  0x63   :  { %760 = vmatpush2.msra.mxu1 %v596_v50  ;;  %690 = vmatprep.subr.mxu0 %v498_v51  ;;  %v574_v49 = vld [vmem:[#allocation7 + $0x478] sm:$0xff]  ;;  %v523_v50 = vld [vmem:[#allocation7 + $0x2e0] sm:$0xff] }
  0x64   :  { %761 = vmatprep.subr.mxu1 %v594_v52  ;;  %691 = vmatpush2.msra.mxu0 %v497_v53  ;;  %v619_v51 = vld [vmem:[#allocation7 + $0x5e0] sm:$0xff] }
  0x65   :  { %762 = vmatpush2.msra.mxu1 %v593_v54  ;;  %692 = vmatprep.subr.mxu0 %v495_v55  ;;  %v475_v52 = vld [vmem:[#allocation7 + $0x160] sm:$0xff]  ;;  %v520_v54 = vld [vmem:[#allocation7 + $0x2c8] sm:$0xff] }
  0x66   :  { %763 = vmatprep.subr.mxu1 %v591_v56  ;;  %693 = vmatpush2.msra.mxu0 %v494_v57  ;;  %v571_v53 = vld [vmem:[#allocation7 + $0x460] sm:$0xff]  ;;  %v616_v55 = vld [vmem:[#allocation7 + $0x5c8] sm:$0xff] }
  0x67   :  { %764 = vmatpush2.msra.mxu1 %v590_v58  ;;  %694 = vmatprep.subr.mxu0 %v492_v59  ;;  %v472_v56 = vld [vmem:[#allocation7 + $0x148] sm:$0xff]  ;;  %v517_v58 = vld [vmem:[#allocation7 + $0x2b0] sm:$0xff] }
  0x68   :  { %765 = vmatprep.subr.mxu1 %v588_v60  ;;  %695 = vmatpush2.msra.mxu0 %v491_v61  ;;  %v568_v57 = vld [vmem:[#allocation7 + $0x448] sm:$0xff]  ;;  %v613_v59 = vld [vmem:[#allocation7 + $0x5b0] sm:$0xff] }
  0x69   :  { %766 = vmatpush2.msra.mxu1 %v587_v62  ;;  %696 = vmatprep.subr.mxu0 %v489_v63  ;;  %v469_v60 = vld [vmem:[#allocation7 + $0x130] sm:$0xff]  ;;  %v514_v62 = vld [vmem:[#allocation7 + $0x298] sm:$0xff] }
  0x6a   :  { %767 = vmatprep.subr.mxu1 %v585_v0  ;;  %697 = vmatpush2.msra.mxu0 %v488_v1  ;;  %v565_v61 = vld [vmem:[#allocation7 + $0x430] sm:$0xff]  ;;  %v610_v63 = vld [vmem:[#allocation7 + $0x598] sm:$0xff] }
  0x6b   :  { %768 = vmatpush2.msra.mxu1 %v584_v2  ;;  %698 = vmatprep.subr.mxu0 %v486_v3  ;;  %v466_v0 = vld [vmem:[#allocation7 + $0x118] sm:$0xff]  ;;  %v511_v2 = vld [vmem:[#allocation7 + $0x280] sm:$0xff] }
  0x6c   :  { %769 = vmatprep.subr.mxu1 %v582_v4  ;;  %699 = vmatpush2.msra.mxu0 %v485_v5  ;;  %v562_v1 = vld [vmem:[#allocation7 + $0x418] sm:$0xff]  ;;  %v607_v3 = vld [vmem:[#allocation7 + $0x580] sm:$0xff] }
  0x6d   :  { %770 = vmatpush2.msra.mxu1 %v581_v6  ;;  %700 = vmatprep.subr.mxu0 %v483_v7  ;;  %v463_v4 = vld [vmem:[#allocation7 + $0x100] sm:$0xff]  ;;  %v508_v6 = vld [vmem:[#allocation7 + $0x268] sm:$0xff] }
  0x6e   :  { %771 = vmatprep.subr.mxu1 %v579_v8  ;;  %701 = vmatpush2.msra.mxu0 %v482_v9  ;;  %v559_v5 = vld [vmem:[#allocation7 + $0x400] sm:$0xff]  ;;  %v604_v7 = vld [vmem:[#allocation7 + $0x568] sm:$0xff] }
  0x6f   :  { %772 = vmatpush2.msra.mxu1 %v578_v10  ;;  %702 = vmatprep.subr.mxu0 %v480_v11  ;;  %v460_v8 = vld [vmem:[#allocation7 + $0xe8] sm:$0xff]  ;;  %v505_v10 = vld [vmem:[#allocation7 + $0x250] sm:$0xff] }
  0x70   :  { %773 = vmatprep.subr.mxu1 %v576_v12  ;;  %703 = vmatpush2.msra.mxu0 %v479_v13  ;;  %v556_v9 = vld [vmem:[#allocation7 + $0x3e8] sm:$0xff]  ;;  %v601_v11 = vld [vmem:[#allocation7 + $0x550] sm:$0xff] }
  0x71   :  { %774 = vmatpush2.msra.mxu1 %v575_v14  ;;  %972 = vmatprep.subr.mxu0 %v526_v15  ;;  %v457_v12 = vld [vmem:[#allocation7 + $0xd0] sm:$0xff]  ;;  %v502_v14 = vld [vmem:[#allocation7 + $0x238] sm:$0xff] }
  0x72   :  { %1007 = vmatprep.subr.mxu1 %v622_v16  ;;  %v553_v13 = vld [vmem:[#allocation7 + $0x3d0] sm:$0xff]  ;;  %v598_v15 = vld [vmem:[#allocation7 + $0x538] sm:$0xff] }
  0x73   :  { %v454_v16 = vld [vmem:[#allocation7 + $0xb8] sm:$0xff] }
  0xea   :  { %v167_v19 = vpop.f32.mrf.mxu0 }
  0xeb   :  { %v238_v20 = vpop.f32.mrf.mxu1 }
  0xec   :  { %v169_v21 = vpop.f32.mrf.mxu0 }
  0xed   :  { %v240_v22 = vpop.f32.mrf.mxu1 }
  0xf0   :  { %v325_v28 = vpop.f32.mrf.mxu0 }
  0xf1   :  { %v396_v30 = vpop.f32.mrf.mxu1  ;;  %v326_v32 = vadd.f32 %v325_v28, %v167_v19  ;;  %v595_v19 = vld [vmem:[#allocation7 + $0x520] sm:$0xff]  ;;  %v544_v28 = vld [vmem:[#allocation7 + $0x388] sm:$0xff] }
  0xf2   :  { %v397_v33 = vadd.f32 %v396_v30, %v238_v20  ;;  %v327_v36 = vpop.f32.mrf.mxu0  ;;  %v451_v20 = vld [vmem:[#allocation7 + $0xa0] sm:$0xff]  ;;  %v589_v30 = vld [vmem:[#allocation7 + $0x4f0] sm:$0xff] }
  0xf3   :  { %v398_v37 = vpop.f32.mrf.mxu1  ;;  %v328_v38 = vadd.f32 %v327_v36, %v169_v21  ;;  %v1212_v40 = vadd.f32 %v406_v29, %v326_v32  ;;  %v547_v21 = vld [vmem:[#allocation7 + $0x3a0] sm:$0xff]  ;;  %v493_v29 = vld [vmem:[#allocation7 + $0x1f0] sm:$0xff]  ;;  %v538_v36 = vld [vmem:[#allocation7 + $0x358] sm:$0xff] }
  0xf4   :  { %v399_v39 = vadd.f32 %v398_v37, %v240_v22  ;;  %v1214_v41 = vadd.f32 %v414_v31, %v397_v33  ;;  %v496_v22 = vld [vmem:[#allocation7 + $0x208] sm:$0xff]  ;;  %v445_v31 = vld [vmem:[#allocation7 + $0x70] sm:$0xff]  ;;  %v490_v33 = vld [vmem:[#allocation7 + $0x1d8] sm:$0xff] }
  0xf5   :  { %v424_v42 = vadd.f32 %v410_v34, %v328_v38  ;;  %v427_v46 = vmax.f32 %v1212_v40, 0.0  ;;  %v541_v32 = vld [vmem:[#allocation7 + $0x370] sm:$0xff]  ;;  %v586_v34 = vld [vmem:[#allocation7 + $0x4d8] sm:$0xff]  ;;  %v487_v37 = vld [vmem:[#allocation7 + $0x1c0] sm:$0xff] }
  0xf6   :  { %v426_v43 = vadd.f32 %v418_v35, %v399_v39  ;;  %v429_v47 = vmax.f32 %v1214_v41, 0.0  ;;  %v442_v35 = vld [vmem:[#allocation7 + $0x58] sm:$0xff]  ;;  %v583_v38 = vld [vmem:[#allocation7 + $0x4c0] sm:$0xff] }
  0xf7   :  { %v428_v44 = vmax.f32 %v424_v42, 0.0  ;;  %v439_v39 = vld [vmem:[#allocation7 + $0x40] sm:$0xff] }
  0xf8   :  { %v430_v45 = vmax.f32 %v426_v43, 0.0  ;;  %v535_v42 = vld [vmem:[#allocation7 + $0x340] sm:$0xff]  ;;  %v484_v43 = vld [vmem:[#allocation7 + $0x1a8] sm:$0xff] }
  0xf9   :  { %704 = vmatprep.mubr.f32.mxu0 %v428_v44 }
  0xfa   :  { %775 = vmatprep.mubr.f32.mxu1 %v430_v45  ;;  %705 = vmatmul.mubr.f32.vlgmr.msra.gmra.mxu0 %v427_v46 }
  0xfb   :  { %776 = vmatmul.mubr.f32.vlgmr.msra.gmra.mxu1 %v429_v47  ;;  %973 = vmatpush3.msra.mxu0 %v478_v48  ;;  %v532_v48 = vld [vmem:[#allocation7 + $0x328] sm:$0xff] }
  0xfc   :  { %1008 = vmatpush3.msra.mxu1 %v574_v49  ;;  %974 = vmatprep.subr.mxu0 %v523_v50  ;;  %v481_v49 = vld [vmem:[#allocation7 + $0x190] sm:$0xff] }
  0xfd   :  { %846 = vmatprep.mubr.f32.mxu0 %v428_v44  ;;  %1009 = vmatprep.subr.mxu1 %v619_v51  ;;  %v580_v44 = vld [vmem:[#allocation7 + $0x4a8] sm:$0xff]  ;;  %v577_v50 = vld [vmem:[#allocation7 + $0x490] sm:$0xff] }
  0xfe   :  { %916 = vmatprep.mubr.f32.mxu1 %v430_v45  ;;  %975 = vmatpush3.msra.mxu0 %v475_v52  ;;  %v436_v45 = vld [vmem:[#allocation7 + $0x28] sm:$0xff]  ;;  %v433_v51 = vld [vmem:[#allocation7 + $0x10] sm:$0xff] }
  0xff   :  { %1010 = vmatpush3.msra.mxu1 %v571_v53  ;;  %976 = vmatprep.subr.mxu0 %v520_v54  ;;  %v529_v52 = vld [vmem:[#allocation7 + $0x310] sm:$0xff]  ;;  %v623_v54 = vld [vmem:[%s1250_s6] sm:$0x7] }
 0x100   :  { %1011 = vmatprep.subr.mxu1 %v616_v55  ;;  %977 = vmatpush3.msra.mxu0 %v472_v56  ;;  %v632_v55 = vrot.slane %v623_v54, %v1207_v26  ;;  %v636_v41 = vrot.slane %v623_v54, %v1202_v24 }
 0x101   :  { %1012 = vmatpush3.msra.mxu1 %v568_v57  ;;  %978 = vmatprep.subr.mxu0 %v517_v58  ;;  %v628_v57 = vrot.slane %v623_v54, %v1200_v23 }
 0x102   :  { %1013 = vmatprep.subr.mxu1 %v613_v59  ;;  %979 = vmatpush3.msra.mxu0 %v469_v60 }
 0x103   :  { %1014 = vmatpush3.msra.mxu1 %v565_v61  ;;  %980 = vmatprep.subr.mxu0 %v514_v62 }
 0x104   :  { %1015 = vmatprep.subr.mxu1 %v610_v63  ;;  %981 = vmatpush3.msra.mxu0 %v466_v0 }
 0x105   :  { %1016 = vmatpush3.msra.mxu1 %v562_v1  ;;  %982 = vmatprep.subr.mxu0 %v511_v2 }
 0x106   :  { %1017 = vmatprep.subr.mxu1 %v607_v3  ;;  %983 = vmatpush3.msra.mxu0 %v463_v4 }
 0x107   :  { %1018 = vmatpush3.msra.mxu1 %v559_v5  ;;  %984 = vmatprep.subr.mxu0 %v508_v6 }
 0x108   :  { %1019 = vmatprep.subr.mxu1 %v604_v7  ;;  %985 = vmatpush3.msra.mxu0 %v460_v8 }
 0x109   :  { %1020 = vmatpush3.msra.mxu1 %v556_v9  ;;  %986 = vmatprep.subr.mxu0 %v505_v10 }
 0x10a   :  { %1021 = vmatprep.subr.mxu1 %v601_v11  ;;  %987 = vmatpush3.msra.mxu0 %v457_v12 }
 0x10b   :  { %1022 = vmatpush3.msra.mxu1 %v553_v13  ;;  %988 = vmatprep.subr.mxu0 %v502_v14 }
 0x10c   :  { %1023 = vmatprep.subr.mxu1 %v598_v15  ;;  %989 = vmatpush3.msra.mxu0 %v454_v16 }
 0x10d   :  { %1024 = vmatpush3.msra.mxu1 %v550_v17  ;;  %990 = vmatprep.subr.mxu0 %v499_v18 }
 0x10e   :  { %1025 = vmatprep.subr.mxu1 %v595_v19  ;;  %991 = vmatpush3.msra.mxu0 %v451_v20 }
 0x10f   :  { %1026 = vmatpush3.msra.mxu1 %v547_v21  ;;  %992 = vmatprep.subr.mxu0 %v496_v22 }
 0x110   :  { %1027 = vmatprep.subr.mxu1 %v592_v25  ;;  %993 = vmatpush3.msra.mxu0 %v448_v27 }
 0x111   :  { %1028 = vmatpush3.msra.mxu1 %v544_v28  ;;  %994 = vmatprep.subr.mxu0 %v493_v29 }
 0x112   :  { %1029 = vmatprep.subr.mxu1 %v589_v30  ;;  %995 = vmatpush3.msra.mxu0 %v445_v31 }
 0x113   :  { %1030 = vmatpush3.msra.mxu1 %v541_v32  ;;  %996 = vmatprep.subr.mxu0 %v490_v33 }
 0x114   :  { %1031 = vmatprep.subr.mxu1 %v586_v34  ;;  %997 = vmatpush3.msra.mxu0 %v442_v35 }
 0x115   :  { %1032 = vmatpush3.msra.mxu1 %v538_v36  ;;  %998 = vmatprep.subr.mxu0 %v487_v37 }
 0x116   :  { %1033 = vmatprep.subr.mxu1 %v583_v38  ;;  %999 = vmatpush3.msra.mxu0 %v439_v39 }
 0x117   :  { %1034 = vmatpush3.msra.mxu1 %v535_v42  ;;  %1000 = vmatprep.subr.mxu0 %v484_v43 }
 0x118   :  { %1035 = vmatprep.subr.mxu1 %v580_v44  ;;  %1001 = vmatpush3.msra.mxu0 %v436_v45 }
 0x119   :  { %1036 = vmatpush3.msra.mxu1 %v532_v48  ;;  %1002 = vmatprep.subr.mxu0 %v481_v49 }
 0x11a   :  { %1037 = vmatprep.subr.mxu1 %v577_v50  ;;  %1003 = vmatpush3.msra.mxu0 %v433_v51 }
 0x11b   :  { %1038 = vmatpush3.msra.mxu1 %v529_v52  ;;  %847 = vmatmul.mubr.f32.vlgmr.msra.gmra.mxu0 %v427_v46 }
 0x11c   :  { %917 = vmatmul.mubr.f32.vlgmr.msra.gmra.mxu1 %v429_v47  ;;  %v925_v47 = vld [vmem:[%s1251_s7] sm:$0x7] }
 0x11d   :  { %v934_v3 = vrot.slane %v925_v47, %v1207_v26  ;;  %v930_v6 = vrot.slane %v925_v47, %v1200_v23  ;;  %v938_v11 = vrot.slane %v925_v47, %v1202_v24  ;;  %v950_v26 = vstv %s1252_s8 }
 0x1ba   :  { %v706_v53 = vpop.f32.mrf.mxu0 }
 0x1bb   :  { %v777_v58 = vpop.f32.mrf.mxu1  ;;  %v707_v60 = vadd.f32 %v706_v53, %v628_v57 }
 0x1bc   :  { %v708_v56 = vpop.f32.mrf.mxu0 }
 0x1bd   :  { %v709_v59 = vadd.f32 %v708_v56, %v632_v55  ;;  %v779_v61 = vpop.f32.mrf.mxu1  ;;  %v778_v63 = vadd.f32 %v777_v58, %v707_v60 }
 0x1bf   :  { %v780_v62 = vadd.f32 %v779_v61, %v709_v59  ;;  %v922_v5 = vmax.f32 %v778_v63, 0.0 }
 0x1c1   :  { %v923_v2 = vmax.f32 %v780_v62, 0.0  ;;  %v942_v12 = vmul.f32 %v930_v6, %v922_v5 }
 0x1c3   :  { %v943_v9 = vmul.f32 %v934_v3, %v923_v2 }
 0x1c5   :  { %v945_v15 = vadd.f32 %v943_v9, %v942_v12 }
 0x1db   :  { %v1004_v40 = vpop.f32.mrf.mxu0 }
 0x1dc   :  { %v1039_v46 = vpop.f32.mrf.mxu1 }
 0x1dd   :  { %v1005_v0 = vpop.f32.mrf.mxu0 }
 0x1de   :  { %v1040_v1 = vpop.f32.mrf.mxu1  ;;  %v1006_v4 = vadd.f32 %v1005_v0, %v1004_v40 }
 0x1df   :  { %v1041_v8 = vadd.f32 %v1040_v1, %v1039_v46 }
 0x1e0   :  { %v849_v7 = vadd.f32 %v1006_v4, %v636_v41 }
 0x1e2   :  { %v919_v10 = vadd.f32 %v1041_v8, %v849_v7 }
 0x1e4   :  { %v924_v13 = vmax.f32 %v919_v10, 0.0 }
 0x1e6   :  { %v944_v14 = vmul.f32 %v938_v11, %v924_v13 }
 0x1e8   :  { %v946_v16 = vadd.f32 %v945_v15, %v944_v14 }
 0x1ea   :  { %947 = vadd.xlane.f32.xlu0 %v946_v16 }
 0x273   :  { %v948_v17 = vpop.xlane.xlu0 %947 }
 0x274   :  { %v951_v18 = vadd.f32 %v950_v26, %v948_v17 }
 0x276   :  { %953 = vst.msk [vmem:[%s1253_s9] sm:$0xff] %vm952_vm3, %v951_v18 }
 0x277   :  { %958 = vsyncpa [#allocation4], 1 }
 0x278   :  { %959 = vsyncpa [#allocation6], 1 }

</bundles_post_ra>
